<compile_context>
chip_gen: v7x
topology: tpu7x:2x2x1
jax: 0.10.0
libtpu: 0.0.40
codegen_flags: <defaults>
</compile_context>

<pallas_src>
import functools

import jax
import jax.numpy as jnp
import numpy as np
from jax.experimental import pallas as pl
from jax.experimental.pallas import tpu as pltpu


def _round_up(x, m):
    return ((x + m - 1) // m) * m


# --------------------------------------------------------------------------
# Fused Pallas kernel: two projections (E-tiled) + optional L2-normalize
# --------------------------------------------------------------------------
def _clip_head_kernel(norm_embed,
                      vis_ref,       # VMEM [B_pad, Vw_pad]  bf16
                      img_w_ref,     # VMEM [Vw_pad, tn]     bf16  (tile n)
                      pooled_ref,    # VMEM [B_pad, Tw_pad]  bf16
                      txt_w_ref,     # VMEM [Tw_pad, tn]     bf16  (tile n)
                      img_out_ref,   # VMEM [Nt, B_pad, tn]  f32   (resident)
                      txt_out_ref,   # VMEM [Nt, B_pad, tn]  f32   (resident)
                      ss_img,        # VMEM scratch [B_pad, 1] f32
                      ss_txt):       # VMEM scratch [B_pad, 1] f32
    n = pl.program_id(0)

    # MXU matmuls on bf16 inputs, f32 accumulation.
    y_img = jnp.dot(vis_ref[...], img_w_ref[...],
                    preferred_element_type=jnp.float32)
    y_txt = jnp.dot(pooled_ref[...], txt_w_ref[...],
                    preferred_element_type=jnp.float32)

    # Store this column-tile into the resident output block (leading-dim index
    # keeps the store a plain full-tile write; no dynamic lane offsets).
    img_out_ref[n] = y_img
    txt_out_ref[n] = y_txt

    if norm_embed:
        @pl.when(n == 0)
        def _():
            ss_img[...] = jnp.zeros_like(ss_img)
            ss_txt[...] = jnp.zeros_like(ss_txt)

        ss_img[...] += jnp.sum(y_img * y_img, axis=-1, keepdims=True)
        ss_txt[...] += jnp.sum(y_txt * y_txt, axis=-1, keepdims=True)

        # F.normalize(eps=1e-12): y / max(||y||, eps) == y * rsqrt(max(ss, eps^2))
        @pl.when(n == pl.num_programs(0) - 1)
        def _():
            eps2 = jnp.float32(1e-24)
            img_scale = jax.lax.rsqrt(jnp.maximum(ss_img[...], eps2))[None]
            txt_scale = jax.lax.rsqrt(jnp.maximum(ss_txt[...], eps2))[None]
            img_out_ref[...] = img_out_ref[...] * img_scale
            txt_out_ref[...] = txt_out_ref[...] * txt_scale


# --------------------------------------------------------------------------
# Wrapper
# --------------------------------------------------------------------------
def clip_head_pallas(vis_feat, pooled, img_w_pad, txt_w_pad,
                     embed_dim, norm_embed):
    """vis_feat: [B, Vw] f32, pooled: [B, Tw] f32.
    img_w_pad: [Vw_pad, E_pad] bf16, txt_w_pad: [Tw_pad, E_pad] bf16
    (zero-padded / cast once at init)."""
    B = vis_feat.shape[0]
    Vw_pad, E_pad = img_w_pad.shape
    Tw_pad = txt_w_pad.shape[0]

    B_pad = _round_up(max(B, 16), 16)
    tn = 256 if (E_pad % 256 == 0) else 128
    n_tiles = E_pad // tn

    # bf16 activations, zero-padded on batch (M) and contraction (K) dims.
    def pad_act(x, k_pad):
        x = x.astype(jnp.bfloat16)
        return jnp.pad(x, ((0, B_pad - B), (0, k_pad - x.shape[1])))

    vis_p = pad_act(vis_feat, Vw_pad)
    pooled_p = pad_act(pooled, Tw_pad)

    # Advisory cost for XLA scheduling around this short, latency-bound call.
    flops = 2 * B_pad * (Vw_pad + Tw_pad) * E_pad
    bytes_accessed = ((Vw_pad + Tw_pad) * E_pad * 2          # bf16 weights
                      + B_pad * (Vw_pad + Tw_pad) * 2        # bf16 activations
                      + 2 * B_pad * E_pad * 4)               # f32 outputs
    cost = pl.CostEstimate(flops=flops,
                           transcendentals=2 * B_pad if norm_embed else 0,
                           bytes_accessed=bytes_accessed)

    # Explicit VMEM budget: double-buffered weight tiles + activations +
    # resident outputs + scratch, with headroom.  Safe under v7x's 64 MiB.
    vmem_bytes = (2 * 2 * (Vw_pad + Tw_pad) * tn * 2
                  + 2 * B_pad * (Vw_pad + Tw_pad) * 2
                  + 2 * 2 * B_pad * E_pad * 4
                  + 2 * B_pad * 128 * 4
                  + (4 << 20))
    vmem_bytes = int(min(vmem_bytes, 64 * 1024 * 1024))

    kernel = functools.partial(_clip_head_kernel, norm_embed)
    img3, txt3 = pl.pallas_call(
        kernel,
        out_shape=(jax.ShapeDtypeStruct((n_tiles, B_pad, tn), jnp.float32),
                   jax.ShapeDtypeStruct((n_tiles, B_pad, tn), jnp.float32)),
        grid=(n_tiles,),
        in_specs=[
            pl.BlockSpec((B_pad, Vw_pad), lambda n: (0, 0)),   # vis_feat
            pl.BlockSpec((Vw_pad, tn), lambda n: (0, n)),      # image_projection tile
            pl.BlockSpec((B_pad, Tw_pad), lambda n: (0, 0)),   # pooled
            pl.BlockSpec((Tw_pad, tn), lambda n: (0, n)),      # text_projection tile
        ],
        out_specs=(pl.BlockSpec((n_tiles, B_pad, tn), lambda n: (0, 0, 0)),
                   pl.BlockSpec((n_tiles, B_pad, tn), lambda n: (0, 0, 0))),
        scratch_shapes=[pltpu.VMEM((B_pad, 1), jnp.float32),
                        pltpu.VMEM((B_pad, 1), jnp.float32)],
        compiler_params=pltpu.CompilerParams(
            dimension_semantics=("arbitrary",),   # resident out + sumsq carry
            vmem_limit_bytes=vmem_bytes),
        cost_estimate=cost,
    )(vis_p, img_w_pad, pooled_p, txt_w_pad)

    # (Nt, B_pad, tn) -> (B_pad, E_pad); tiny XLA transpose, then drop pads.
    img = jnp.transpose(img3, (1, 0, 2)).reshape(B_pad, E_pad)
    txt = jnp.transpose(txt3, (1, 0, 2)).reshape(B_pad, E_pad)
    return img[:B, :embed_dim], txt[:B, :embed_dim]


# --------------------------------------------------------------------------
# CLIP_HF module (JAX / Pallas)
# --------------------------------------------------------------------------
class CLIPHFPallas:
    def __init__(self, embed_dim, vision_width, text_width,
                 vocab_size, temperature_init=0.07, seed=0):
        self.embed_dim = embed_dim
        self.vision_width = vision_width
        self.text_width = text_width
        self.text_is_regressive = True   # LaViLa GPT2-style regressive text head

        key = jax.random.PRNGKey(seed)
        k1, k2, k3, k4 = jax.random.split(key, 4)

        # projection == 'default': plain parameter matrices, normal init (f32 master)
        self.image_projection = (vision_width ** -0.5) * jax.random.normal(
            k1, (vision_width, embed_dim), dtype=jnp.float32)
        self.text_projection = (text_width ** -0.5) * jax.random.normal(
            k2, (text_width, embed_dim), dtype=jnp.float32)
        self.logit_scale = jnp.asarray(jnp.log(1.0 / temperature_init),
                                       dtype=jnp.float32)

        # Kernel-side copies: zero-padded (K to 128, E to 128) + bf16, built once.
        E_pad = _round_up(embed_dim, 128)
        Vw_pad = _round_up(vision_width, 128)
        Tw_pad = _round_up(text_width, 128)
        self.image_projection_k = jnp.pad(
            self.image_projection,
            ((0, Vw_pad - vision_width), (0, E_pad - embed_dim))).astype(jnp.bfloat16)
        self.text_projection_k = jnp.pad(
            self.text_projection,
            ((0, Tw_pad - text_width), (0, E_pad - embed_dim))).astype(jnp.bfloat16)

        # --- deterministic stand-in backbones (external submodules) ---
        # vision: mean-pool over H,W then linear C -> vision_width
        self.vis_backbone_w = 0.02 * jax.random.normal(
            k3, (4, vision_width), dtype=jnp.float32)
        # text: token embedding table vocab -> text_width
        self.txt_embedding = 0.02 * jax.random.normal(
            k4, (vocab_size, text_width), dtype=jnp.float32)

    # ---- stand-in for self.visual(image) : NCHW -> [B, vision_width] ----
    def _visual_backbone(self, image_nchw):
        pooled = jnp.mean(image_nchw, axis=(2, 3))            # [B, C]
        return pooled @ self.vis_backbone_w                   # [B, vision_width]

    # ---- stand-in for self.textual(text).last_hidden_state ----
    def _textual_backbone(self, tokens):
        return jnp.take(self.txt_embedding, tokens, axis=0)   # [B, S, text_width]

    def __call__(self, image, text, norm_embed=False):
        vis_feat = self._visual_backbone(image)               # [B, vision_width]
        last_hidden = self._textual_backbone(text)            # [B, S, text_width]

        # Regressive pooling (torch.argmax first-occurrence semantics); cheap
        # XLA gather on small [B, S] / [B, Tw] arrays, hoisted out of the kernel.
        pool_idx = jnp.argmax(text, axis=-1)                  # [B]
        pooled = jnp.take_along_axis(
            last_hidden, pool_idx[:, None, None], axis=1)[:, 0, :]   # [B, Tw]

        image_embed, text_embed = clip_head_pallas(
            vis_feat, pooled,
            self.image_projection_k, self.text_projection_k,
            self.embed_dim, norm_embed)

        return {
            'image_embed': image_embed,
            'text_embed': text_embed,
            'logit_scale': jnp.exp(self.logit_scale),
        }


# --------------------------------------------------------------------------
# Pure-JAX reference (f32 weights) for a loose numerical check
# --------------------------------------------------------------------------
def _reference(model, image, text, norm_embed):
    vis_feat = model._visual_backbone(image)
    last_hidden = model._textual_backbone(text)
    img = vis_feat @ model.image_projection
    idx = jnp.argmax(text, axis=-1)
    pooled = last_hidden[jnp.arange(text.shape[0]), idx]
    txt = pooled @ model.text_projection
    if norm_embed:
        img = img / jnp.maximum(
            jnp.linalg.norm(img, axis=-1, keepdims=True), 1e-12)
        txt = txt / jnp.maximum(
            jnp.linalg.norm(txt, axis=-1, keepdims=True), 1e-12)
    return img, txt


# --------------------------------------------------------------------------
# Demo
# --------------------------------------------------------------------------
if __name__ == "__main__":
    B, C, H, W = 2, 4, 16, 16
    S = 8
    embed_dim, vision_width, text_width, vocab = 32, 64, 48, 64

    key = jax.random.PRNGKey(0)
    k_img, k_txt = jax.random.split(key)
    image = jax.random.normal(k_img, (B, C, H, W), dtype=jnp.float32)  # NCHW
    text = jax.random.randint(k_txt, (B, S), 0, vocab, dtype=jnp.int32)

    model = CLIPHFPallas(embed_dim, vision_width, text_width, vocab,
                         temperature_init=0.07, seed=0)
    out = model(image, text, norm_embed=True)
    jax.block_until_ready(out)

    assert out['image_embed'].shape == (B, embed_dim)
    assert out['text_embed'].shape == (B, embed_dim)
    assert out['logit_scale'].shape == ()

    ref_img, ref_txt = _reference(model, image, text, norm_embed=True)
    np.testing.assert_allclose(np.asarray(out['image_embed']),
                               np.asarray(ref_img), atol=5e-2, rtol=5e-2)
    np.testing.assert_allclose(np.asarray(out['text_embed']),
                               np.asarray(ref_txt), atol=5e-2, rtol=5e-2)

    print("KERNEL_OK")
</pallas_src>

<mosaic_0001>
module attributes {stable_mosaic.version = 11 : i64} {
  func.func @_clip_head_kernel(%arg0: i32, %arg1: memref<16x128xbf16, #tpu.memory_space<vmem>>, %arg2: memref<128x128xbf16, #tpu.memory_space<vmem>>, %arg3: memref<16x128xbf16, #tpu.memory_space<vmem>>, %arg4: memref<128x128xbf16, #tpu.memory_space<vmem>>, %arg5: memref<1x16x128xf32, #tpu.memory_space<vmem>>, %arg6: memref<1x16x128xf32, #tpu.memory_space<vmem>>, %arg7: memref<16x1xf32, #tpu.memory_space<vmem>>, %arg8: memref<16x1xf32, #tpu.memory_space<vmem>>) attributes {dimension_semantics = [#tpu.dimension_semantics<arbitrary>], iteration_bounds = array<i64: 1>, scalar_prefetch = 0 : i64, scratch_operands = 2 : i64, tpu.core_type = #tpu.core_type<tc>, window_params = [{pipeline_mode = #tpu.pipeline_mode<synchronous>, transform_indices = @transform_0, window_bounds = array<i64: 16, 128>}, {transform_indices = @transform_1, window_bounds = array<i64: 128, 128>}, {pipeline_mode = #tpu.pipeline_mode<synchronous>, transform_indices = @transform_2, window_bounds = array<i64: 16, 128>}, {transform_indices = @transform_3, window_bounds = array<i64: 128, 128>}, {pipeline_mode = #tpu.pipeline_mode<synchronous>, transform_indices = @transform_4, window_bounds = array<i64: 1, 16, 128>}, {pipeline_mode = #tpu.pipeline_mode<synchronous>, transform_indices = @transform_5, window_bounds = array<i64: 1, 16, 128>}]} {
    %c0 = arith.constant 0 : index
    %c0_0 = arith.constant 0 : index
    %0 = vector.load %arg1[%c0, %c0_0] : memref<16x128xbf16, #tpu.memory_space<vmem>>, vector<16x128xbf16>
    %c0_1 = arith.constant 0 : index
    %c0_2 = arith.constant 0 : index
    %1 = vector.load %arg2[%c0_1, %c0_2] : memref<128x128xbf16, #tpu.memory_space<vmem>>, vector<128x128xbf16>
    %cst = arith.constant dense<0.000000e+00> : vector<16x128xf32>
    %2 = tpu.matmul %0, %1, %cst {dimension_numbers = #tpu.dot_dimension_numbers<[1], [0], [0], [1], [0, 0, 1, 1], [], []>} : vector<16x128xbf16>, vector<128x128xbf16>, vector<16x128xf32> -> vector<16x128xf32>
    %c0_3 = arith.constant 0 : index
    %c0_4 = arith.constant 0 : index
    %3 = vector.load %arg3[%c0_3, %c0_4] : memref<16x128xbf16, #tpu.memory_space<vmem>>, vector<16x128xbf16>
    %c0_5 = arith.constant 0 : index
    %c0_6 = arith.constant 0 : index
    %4 = vector.load %arg4[%c0_5, %c0_6] : memref<128x128xbf16, #tpu.memory_space<vmem>>, vector<128x128xbf16>
    %cst_7 = arith.constant dense<0.000000e+00> : vector<16x128xf32>
    %5 = tpu.matmul %3, %4, %cst_7 {dimension_numbers = #tpu.dot_dimension_numbers<[1], [0], [0], [1], [0, 0, 1, 1], [], []>} : vector<16x128xbf16>, vector<128x128xbf16>, vector<16x128xf32> -> vector<16x128xf32>
    %6 = arith.index_cast %arg0 : i32 to index
    %c0_8 = arith.constant 0 : index
    %c0_9 = arith.constant 0 : index
    %7 = vector.load %arg5[%6, %c0_8, %c0_9] : memref<1x16x128xf32, #tpu.memory_space<vmem>>, vector<1x16x128xf32>
    %8 = vector.shape_cast %7 : vector<1x16x128xf32> to vector<16x128xf32>
    %9 = vector.shape_cast %2 : vector<16x128xf32> to vector<1x16x128xf32>
    tpu.vector_store %arg5[%6, %c0_8, %c0_9], %9 {strides = array<i32>} : memref<1x16x128xf32, #tpu.memory_space<vmem>>, vector<1x16x128xf32>,
    %10 = arith.index_cast %arg0 : i32 to index
    %c0_10 = arith.constant 0 : index
    %c0_11 = arith.constant 0 : index
    %11 = vector.load %arg6[%10, %c0_10, %c0_11] : memref<1x16x128xf32, #tpu.memory_space<vmem>>, vector<1x16x128xf32>
    %12 = vector.shape_cast %11 : vector<1x16x128xf32> to vector<16x128xf32>
    %13 = vector.shape_cast %5 : vector<16x128xf32> to vector<1x16x128xf32>
    tpu.vector_store %arg6[%10, %c0_10, %c0_11], %13 {strides = array<i32>} : memref<1x16x128xf32, #tpu.memory_space<vmem>>, vector<1x16x128xf32>,
    %c0_i32 = arith.constant 0 : i32
    %14 = arith.cmpi eq, %arg0, %c0_i32 : i32
    %15 = arith.extui %14 : i1 to i32
    %c0_i32_12 = arith.constant 0 : i32
    %16 = arith.cmpi ne, %15, %c0_i32_12 : i32
    scf.if %16 {
      %cst_25 = arith.constant 0.000000e+00 : f32
      %32 = vector.broadcast %cst_25 : f32 to vector<16x1xf32>
      %c0_26 = arith.constant 0 : index
      %c0_27 = arith.constant 0 : index
      %33 = vector.load %arg7[%c0_26, %c0_27] : memref<16x1xf32, #tpu.memory_space<vmem>>, vector<16x1xf32>
      tpu.vector_store %arg7[%c0_26, %c0_27], %32 {strides = array<i32>} : memref<16x1xf32, #tpu.memory_space<vmem>>, vector<16x1xf32>,
      %cst_28 = arith.constant 0.000000e+00 : f32
      %34 = vector.broadcast %cst_28 : f32 to vector<16x1xf32>
      %c0_29 = arith.constant 0 : index
      %c0_30 = arith.constant 0 : index
      %35 = vector.load %arg8[%c0_29, %c0_30] : memref<16x1xf32, #tpu.memory_space<vmem>>, vector<16x1xf32>
      tpu.vector_store %arg8[%c0_29, %c0_30], %34 {strides = array<i32>} : memref<16x1xf32, #tpu.memory_space<vmem>>, vector<16x1xf32>,
    } else {
    }
    %c0_13 = arith.constant 0 : index
    %c0_14 = arith.constant 0 : index
    %17 = vector.load %arg7[%c0_13, %c0_14] : memref<16x1xf32, #tpu.memory_space<vmem>>, vector<16x1xf32>
    %18 = arith.mulf %2, %2 : vector<16x128xf32>
    %cst_15 = arith.constant dense<0.000000e+00> : vector<16xf32>
    %19 = vector.multi_reduction <add>, %18, %cst_15 [1] : vector<16x128xf32> to vector<16xf32>
    %20 = vector.shape_cast %19 : vector<16xf32> to vector<16x1xf32>
    %21 = arith.addf %17, %20 : vector<16x1xf32>
    %c0_16 = arith.constant 0 : index
    %c0_17 = arith.constant 0 : index
    %22 = vector.load %arg7[%c0_16, %c0_17] : memref<16x1xf32, #tpu.memory_space<vmem>>, vector<16x1xf32>
    tpu.vector_store %arg7[%c0_16, %c0_17], %21 {strides = array<i32>} : memref<16x1xf32, #tpu.memory_space<vmem>>, vector<16x1xf32>,
    %c0_18 = arith.constant 0 : index
    %c0_19 = arith.constant 0 : index
    %23 = vector.load %arg8[%c0_18, %c0_19] : memref<16x1xf32, #tpu.memory_space<vmem>>, vector<16x1xf32>
    %24 = arith.mulf %5, %5 : vector<16x128xf32>
    %cst_20 = arith.constant dense<0.000000e+00> : vector<16xf32>
    %25 = vector.multi_reduction <add>, %24, %cst_20 [1] : vector<16x128xf32> to vector<16xf32>
    %26 = vector.shape_cast %25 : vector<16xf32> to vector<16x1xf32>
    %27 = arith.addf %23, %26 : vector<16x1xf32>
    %c0_21 = arith.constant 0 : index
    %c0_22 = arith.constant 0 : index
    %28 = vector.load %arg8[%c0_21, %c0_22] : memref<16x1xf32, #tpu.memory_space<vmem>>, vector<16x1xf32>
    tpu.vector_store %arg8[%c0_21, %c0_22], %27 {strides = array<i32>} : memref<16x1xf32, #tpu.memory_space<vmem>>, vector<16x1xf32>,
    %c0_i32_23 = arith.constant 0 : i32
    %29 = arith.cmpi eq, %arg0, %c0_i32_23 : i32
    %30 = arith.extui %29 : i1 to i32
    %c0_i32_24 = arith.constant 0 : i32
    %31 = arith.cmpi ne, %30, %c0_i32_24 : i32
    scf.if %31 {
      %c0_25 = arith.constant 0 : index
      %c0_26 = arith.constant 0 : index
      %32 = vector.load %arg7[%c0_25, %c0_26] : memref<16x1xf32, #tpu.memory_space<vmem>>, vector<16x1xf32>
      %cst_27 = arith.constant 1.000000e-24 : f32
      %33 = vector.broadcast %cst_27 : f32 to vector<16x1xf32>
      %34 = arith.maximumf %32, %33 : vector<16x1xf32>
      %35 = math.rsqrt %34 : vector<16x1xf32>
      %36 = vector.shape_cast %35 : vector<16x1xf32> to vector<1x16x1xf32>
      %c0_28 = arith.constant 0 : index
      %c0_29 = arith.constant 0 : index
      %37 = vector.load %arg8[%c0_28, %c0_29] : memref<16x1xf32, #tpu.memory_space<vmem>>, vector<16x1xf32>
      %cst_30 = arith.constant 1.000000e-24 : f32
      %38 = vector.broadcast %cst_30 : f32 to vector<16x1xf32>
      %39 = arith.maximumf %37, %38 : vector<16x1xf32>
      %40 = math.rsqrt %39 : vector<16x1xf32>
      %41 = vector.shape_cast %40 : vector<16x1xf32> to vector<1x16x1xf32>
      %c0_31 = arith.constant 0 : index
      %c0_32 = arith.constant 0 : index
      %c0_33 = arith.constant 0 : index
      %42 = vector.load %arg5[%c0_31, %c0_32, %c0_33] : memref<1x16x128xf32, #tpu.memory_space<vmem>>, vector<1x16x128xf32>
      %43 = vector.broadcast %36 : vector<1x16x1xf32> to vector<1x16x128xf32>
      %44 = arith.mulf %42, %43 : vector<1x16x128xf32>
      %c0_34 = arith.constant 0 : index
      %c0_35 = arith.constant 0 : index
      %c0_36 = arith.constant 0 : index
      %45 = vector.load %arg5[%c0_34, %c0_35, %c0_36] : memref<1x16x128xf32, #tpu.memory_space<vmem>>, vector<1x16x128xf32>
      tpu.vector_store %arg5[%c0_34, %c0_35, %c0_36], %44 {strides = array<i32>} : memref<1x16x128xf32, #tpu.memory_space<vmem>>, vector<1x16x128xf32>,
      %c0_37 = arith.constant 0 : index
      %c0_38 = arith.constant 0 : index
      %c0_39 = arith.constant 0 : index
      %46 = vector.load %arg6[%c0_37, %c0_38, %c0_39] : memref<1x16x128xf32, #tpu.memory_space<vmem>>, vector<1x16x128xf32>
      %47 = vector.broadcast %41 : vector<1x16x1xf32> to vector<1x16x128xf32>
      %48 = arith.mulf %46, %47 : vector<1x16x128xf32>
      %c0_40 = arith.constant 0 : index
      %c0_41 = arith.constant 0 : index
      %c0_42 = arith.constant 0 : index
      %49 = vector.load %arg6[%c0_40, %c0_41, %c0_42] : memref<1x16x128xf32, #tpu.memory_space<vmem>>, vector<1x16x128xf32>
      tpu.vector_store %arg6[%c0_40, %c0_41, %c0_42], %48 {strides = array<i32>} : memref<1x16x128xf32, #tpu.memory_space<vmem>>, vector<1x16x128xf32>,
    } else {
    }
    return
  }
  func.func @transform_0(%arg0: i32) -> (i32, i32) {
    %c0_i32 = arith.constant 0 : i32
    %c0_i32_0 = arith.constant 0 : i32
    %c0_i32_1 = arith.constant 0 : i32
    return %c0_i32, %c0_i32_0 : i32, i32
  }
  func.func @transform_1(%arg0: i32) -> (i32, i32) {
    %c0_i32 = arith.constant 0 : i32
    %c0_i32_0 = arith.constant 0 : i32
    return %c0_i32, %arg0 : i32, i32
  }
  func.func @transform_2(%arg0: i32) -> (i32, i32) {
    %c0_i32 = arith.constant 0 : i32
    %c0_i32_0 = arith.constant 0 : i32
    %c0_i32_1 = arith.constant 0 : i32
    return %c0_i32, %c0_i32_0 : i32, i32
  }
  func.func @transform_3(%arg0: i32) -> (i32, i32) {
    %c0_i32 = arith.constant 0 : i32
    %c0_i32_0 = arith.constant 0 : i32
    return %c0_i32, %arg0 : i32, i32
  }
  func.func @transform_4(%arg0: i32) -> (i32, i32, i32) {
    %c0_i32 = arith.constant 0 : i32
    %c0_i32_0 = arith.constant 0 : i32
    %c0_i32_1 = arith.constant 0 : i32
    %c0_i32_2 = arith.constant 0 : i32
    return %c0_i32, %c0_i32_0, %c0_i32_1 : i32, i32, i32
  }
  func.func @transform_5(%arg0: i32) -> (i32, i32, i32) {
    %c0_i32 = arith.constant 0 : i32
    %c0_i32_0 = arith.constant 0 : i32
    %c0_i32_1 = arith.constant 0 : i32
    %c0_i32_2 = arith.constant 0 : i32
    return %c0_i32, %c0_i32_0, %c0_i32_1 : i32, i32, i32
  }
}

</mosaic_0001>

<bundles_post_ra>
// kernel: tpu_custom_call.1
= control target key start
LH: loop header
LB: loop body
LE: loop exit
PB: predicated region body
PF: predicated region fallthrough
CT: control target
= control target key end

     0   :  { %11 = vsyncpa [#allocation5], 0  ;;  %s839_s0 = inlined_call_operand.hbm [shape: bf16[16,128], index: 0, kind: input, shape index: {}]   ;;  %s840_s1 = inlined_call_operand.hbm [shape: bf16[128,128], index: 1, kind: input, shape index: {}]   ;;  %s841_s2 = inlined_call_operand.hbm [shape: bf16[16,128], index: 2, kind: input, shape index: {}]   ;;  %s842_s3 = inlined_call_operand.hbm [shape: bf16[128,128], index: 3, kind: input, shape index: {}]   ;;  %s843_s4 = inlined_call_operand.hbm [shape: f32[1,16,128], index: 4, kind: output, shape index: {0}]   ;;  %s844_s5 = inlined_call_operand.hbm [shape: f32[1,16,128], index: 5, kind: output, shape index: {1}]  }
   0x1   :  { %12 = vsyncpa [#allocation8], 0 }
   0x2   :  { %13 = vsyncpa [#allocation11], 0 }
   0x3   :  { %14 = vsyncpa [#allocation6], 0 }
   0x4   :  { %15 = vsyncpa [#allocation14], 0  ;;  %s685_s18 = smov [#allocation7]   ;;  %s686_s20 = smov [#allocation4]  }
   0x5   :  { %s33_s19 = sshll.u32 %s685_s18, 4  ;;  %s21_s21 = sshll.u32 %s686_s20, 4  ;;  %s34_s19 = int_to_ptr.vmem [resolvable:$true] %s33_s19  ;;  %s728_s21 = int_to_ptr.vmem [resolvable:$true] %s21_s21 }
   0x6   :  { %s543_s24 = scalar_lea.hbm %s840_s1, 1024 }
   0x7   :  { %p544_p0 = scmp.ne.s32.totalorder %s840_s1, %s543_s24  ;;  %p547_p1 = scmp.lt.u32.totalorder %s543_s24, %s840_s1 }
   0x9   :  { %p549_p2 = pnand %p547_p1, %p544_p0 }
   0xb   :  { %552 = shalt.err (!%p549_p2)
}
   0xc   :  { %s553_s29 = scalar_lea.vmem %s34_s19, 1024  ;;  %p558_p4 = scmp.lt.s32.totalorder %s34_s19, %s34_s19 }
   0xd   :  { %p554_p3 = scmp.ne.s32.totalorder %s34_s19, %s553_s29  ;;  %p559_p5 = scmp.lt.s32.totalorder %s553_s29, %s553_s29 }
   0xf   :  { %p560_p6 = por %p559_p5, %p558_p4 }
  0x11   :  { %p561_p7 = pnand %p560_p6, %p554_p3 }
  0x13   :  { %564 = shalt.err (!%p561_p7)
}
  0x14   :  { %s687_s30 = smov 64   ;;  %s688_s6 = smov 4  }
  0x15   :  { %39 = dma.hbm_to_vmem [thread:$0]  %s840_s1, 1024, %s34_s19, [#allocation8], %s687_s30, %s687_s30, %s688_s6  }
  0x16   :  { %s565_s11 = scalar_lea.hbm %s839_s0, 128 }
  0x17   :  { %p566_p8 = scmp.ne.s32.totalorder %s839_s0, %s565_s11  ;;  %p569_p9 = scmp.lt.u32.totalorder %s565_s11, %s839_s0 }
  0x19   :  { %p571_p10 = pnand %p569_p9, %p566_p8 }
  0x1b   :  { %574 = shalt.err (!%p571_p10)
}
  0x1c   :  { %s575_s16 = scalar_lea.vmem %s728_s21, 128  ;;  %p580_p12 = scmp.lt.s32.totalorder %s728_s21, %s728_s21 }
  0x1d   :  { %p576_p11 = scmp.ne.s32.totalorder %s728_s21, %s575_s16  ;;  %p581_p13 = scmp.lt.s32.totalorder %s575_s16, %s575_s16 }
  0x1f   :  { %p582_p0 = por %p581_p13, %p580_p12 }
  0x21   :  { %p583_p1 = pnand %p582_p0, %p576_p11 }
  0x23   :  { %586 = shalt.err (!%p583_p1)
}
  0x24   :  { %27 = dma.hbm_to_vmem [thread:$0]  %s839_s0, 128, %s728_s21, [#allocation5], %s687_s30, %s687_s30, %s688_s6  }
  0x25   :  { %s689_s18 = smov [#allocation9]   ;;  %s690_s20 = smov [#allocation10]  }
  0x26   :  { %s45_s19 = sshll.u32 %s689_s18, 4  ;;  %s57_s22 = sshll.u32 %s690_s20, 4  ;;  %s46_s19 = int_to_ptr.vmem [resolvable:$true] %s45_s19  ;;  %s765_s22 = int_to_ptr.vmem [resolvable:$true] %s57_s22 }
  0x27   :  { %s587_s25 = scalar_lea.hbm %s841_s2, 128 }
  0x28   :  { %p588_p2 = scmp.ne.s32.totalorder %s841_s2, %s587_s25  ;;  %p591_p3 = scmp.lt.u32.totalorder %s587_s25, %s841_s2 }
  0x2a   :  { %p593_p4 = pnand %p591_p3, %p588_p2 }
  0x2c   :  { %596 = shalt.err (!%p593_p4)
}
  0x2d   :  { %s597_s0 = scalar_lea.vmem %s46_s19, 128  ;;  %p602_p6 = scmp.lt.s32.totalorder %s46_s19, %s46_s19 }
  0x2e   :  { %p598_p5 = scmp.ne.s32.totalorder %s46_s19, %s597_s0  ;;  %p603_p7 = scmp.lt.s32.totalorder %s597_s0, %s597_s0 }
  0x30   :  { %p604_p8 = por %p603_p7, %p602_p6 }
  0x32   :  { %p605_p9 = pnand %p604_p8, %p598_p5 }
  0x34   :  { %608 = shalt.err (!%p605_p9)
}
  0x35   :  { %51 = dma.hbm_to_vmem [thread:$0]  %s841_s2, 128, %s46_s19, [#allocation8], %s687_s30, %s687_s30, %s688_s6  }
  0x36   :  { %s609_s10 = scalar_lea.hbm %s842_s3, 1024 }
  0x37   :  { %p610_p10 = scmp.ne.s32.totalorder %s842_s3, %s609_s10  ;;  %p613_p11 = scmp.lt.u32.totalorder %s609_s10, %s842_s3 }
  0x39   :  { %p615_p12 = pnand %p613_p11, %p610_p10 }
  0x3b   :  { %618 = shalt.err (!%p615_p12)
}
  0x3c   :  { %s619_s15 = scalar_lea.vmem %s765_s22, 1024  ;;  %p624_p0 = scmp.lt.s32.totalorder %s765_s22, %s765_s22 }
  0x3d   :  { %p620_p13 = scmp.ne.s32.totalorder %s765_s22, %s619_s15  ;;  %p625_p1 = scmp.lt.s32.totalorder %s619_s15, %s619_s15 }
  0x3f   :  { %p626_p2 = por %p625_p1, %p624_p0 }
  0x41   :  { %p627_p3 = pnand %p626_p2, %p620_p13 }
  0x43   :  { %630 = shalt.err (!%p627_p3)
}
  0x44   :  { %63 = dma.hbm_to_vmem [thread:$0]  %s842_s3, 1024, %s765_s22, [#allocation11], %s687_s30, %s687_s30, %s688_s6  }
  0x45   :  { %675 = dma.done.wait [#allocation5], 128  }
  0x46   :  { %676 = vsyncadd [#allocation5], 4294967168 }
  0x47   :  { %677 = dma.done.wait [#allocation8], 1152  }
  0x48   :  { %678 = vsyncadd [#allocation8], 4294966144 }
  0x49   :  { %679 = dma.done.wait [#allocation11], 1024  }
  0x4a   :  { %680 = vsyncadd [#allocation11], 4294966272  ;;  %v691_v0 = vmov 0.0   ;;  %vm692_vm0 = vmmov 0   ;;  %v517_v1 = vld [vmem:[#allocation7] sm:$0xff]   ;;  %v518_v2 = vld [vmem:[#allocation10] sm:$0xff]  }
  0x4b   :  { %462 = vmatprep.subr.bf16.mxu0 %v691_v0  ;;  %482 = vmatprep.subr.bf16.mxu1 %v691_v0  ;;  %v519_v3 = vld [vmem:[#allocation7 + $0x8] sm:$0xff]   ;;  %v520_v4 = vld [vmem:[#allocation10 + $0x8] sm:$0xff]   ;;  %v522_v6 = vld [vmem:[#allocation10 + $0x10] sm:$0xff]   ;;  %vm314_vm1 = vcmask 7168   ;;  %v693_v31 = vmov 0   ;;  %s694_s3 = smov [#allocation12]  }
  0x4c   :  { %478 = vmatprep.mubr.msk.bf16.mxu0 %vm692_vm0, %v691_v0  ;;  %498 = vmatprep.mubr.msk.bf16.mxu1 %vm692_vm0, %v691_v0  ;;  %v521_v5 = vld [vmem:[#allocation7 + $0x10] sm:$0xff]   ;;  %v523_v7 = vld [vmem:[#allocation7 + $0x18] sm:$0xff]   ;;  %v524_v8 = vld [vmem:[#allocation10 + $0x18] sm:$0xff]   ;;  %317 = vst.msk [vmem:[#allocation3] sm:$0xff] %vm314_vm1, %v691_v0  ;;  %s396_s30 = sshll.u32 %s694_s3, 4  ;;  %s695_s6 = smov [#allocation13]   ;;  %s397_s30 = int_to_ptr.vmem [resolvable:$true] %s396_s30 }
  0x4d   :  { %463 = vmatpush3.bf16.msra.mxu0 %v517_v1  ;;  %483 = vmatpush3.bf16.msra.mxu1 %v518_v2  ;;  %v525_v9 = vld [vmem:[#allocation7 + $0x20] sm:$0xff]   ;;  %v526_v10 = vld [vmem:[#allocation10 + $0x20] sm:$0xff]   ;;  %v528_v12 = vld [vmem:[#allocation10 + $0x28] sm:$0xff]   ;;  %315 = vst.msk [vmem:[#allocation2] sm:$0xff] %vm314_vm1, %v691_v0  ;;  %s408_s1 = sshll.u32 %s695_s6, 4  ;;  %s631_s17 = scalar_lea.vmem %s397_s30, 256  ;;  %s409_s1 = int_to_ptr.vmem [resolvable:$true] %s408_s1 }
  0x4e   :  { %464 = vmatprep.subr.bf16.mxu0 %v691_v0  ;;  %484 = vmatprep.subr.bf16.mxu1 %v691_v0  ;;  %v527_v11 = vld [vmem:[#allocation7 + $0x28] sm:$0xff]   ;;  %v529_v13 = vld [vmem:[#allocation7 + $0x30] sm:$0xff]   ;;  %v530_v14 = vld [vmem:[#allocation10 + $0x30] sm:$0xff]   ;;  %316 = vst.msk [vmem:[#allocation2 + $0x8] sm:$0xff] %vm314_vm1, %v691_v0  ;;  %p632_p4 = scmp.ne.s32.totalorder %s397_s30, %s631_s17  ;;  %p636_p5 = scmp.lt.s32.totalorder %s397_s30, %s397_s30 }
  0x4f   :  { %v531_v15 = vld [vmem:[#allocation7 + $0x38] sm:$0xff]   ;;  %v532_v16 = vld [vmem:[#allocation10 + $0x38] sm:$0xff]   ;;  %318 = vst.msk [vmem:[#allocation3 + $0x8] sm:$0xff] %vm314_vm1, %v691_v0  ;;  %516 = vset.pattern.permute.xlu1 %v693_v31  ;;  %515 = vset.pattern.permute.xlu0 %v693_v31  ;;  %p637_p6 = scmp.lt.s32.totalorder %s631_s17, %s631_s17 }
  0x50   :  { %v533_v17 = vld [vmem:[#allocation4] sm:$0xff]   ;;  %v534_v18 = vld [vmem:[#allocation9] sm:$0xff]  }
  0x51   :  { %465 = vmatpush3.bf16.msra.mxu0 %v519_v3  ;;  %485 = vmatpush3.bf16.msra.mxu1 %v520_v4  ;;  %p638_p7 = por %p637_p6, %p636_p5 }
  0x52   :  { %466 = vmatprep.subr.bf16.mxu0 %v691_v0  ;;  %486 = vmatprep.subr.bf16.mxu1 %v691_v0 }
  0x53   :  { %v332_v33 = vld [vmem:[#allocation3] sm:$0xff]  ;;  %p639_p8 = pnand %p638_p7, %p632_p4 }
  0x54   :  { %v319_v32 = vld [vmem:[#allocation2] sm:$0xff] }
  0x55   :  { %467 = vmatpush3.bf16.msra.mxu0 %v521_v5  ;;  %487 = vmatpush3.bf16.msra.mxu1 %v522_v6  ;;  %v320_v38 = vld [vmem:[#allocation2 + $0x8] sm:$0xff] }
  0x56   :  { %468 = vmatprep.subr.bf16.mxu0 %v691_v0  ;;  %488 = vmatprep.subr.bf16.mxu1 %v691_v0  ;;  %v333_v39 = vld [vmem:[#allocation3 + $0x8] sm:$0xff] }
  0x59   :  { %469 = vmatpush3.bf16.msra.mxu0 %v523_v7  ;;  %489 = vmatpush3.bf16.msra.mxu1 %v524_v8 }
  0x5a   :  { %470 = vmatprep.subr.bf16.mxu0 %v691_v0  ;;  %490 = vmatprep.subr.bf16.mxu1 %v691_v0 }
  0x5d   :  { %471 = vmatpush3.bf16.msra.mxu0 %v525_v9  ;;  %491 = vmatpush3.bf16.msra.mxu1 %v526_v10 }
  0x5e   :  { %472 = vmatprep.subr.bf16.mxu0 %v691_v0  ;;  %492 = vmatprep.subr.bf16.mxu1 %v691_v0 }
  0x61   :  { %473 = vmatpush3.bf16.msra.mxu0 %v527_v11  ;;  %493 = vmatpush3.bf16.msra.mxu1 %v528_v12 }
  0x62   :  { %474 = vmatprep.subr.bf16.mxu0 %v691_v0  ;;  %494 = vmatprep.subr.bf16.mxu1 %v691_v0 }
  0x65   :  { %475 = vmatpush3.bf16.msra.mxu0 %v529_v13  ;;  %495 = vmatpush3.bf16.msra.mxu1 %v530_v14 }
  0x66   :  { %476 = vmatprep.subr.bf16.mxu0 %v691_v0  ;;  %496 = vmatprep.subr.bf16.mxu1 %v691_v0 }
  0x69   :  { %477 = vmatpush3.bf16.msra.mxu0 %v531_v15  ;;  %497 = vmatpush3.bf16.msra.mxu1 %v532_v16 }
  0x6c   :  { %479 = vmatmul.mubr.bf16.vlgmr.msra.gmra.mrb[0].mxu0 %v533_v17  ;;  %499 = vmatmul.mubr.bf16.vlgmr.msra.gmra.mrb[0].mxu1 %v534_v18 }
 0x13f   :  { %v183_v19 = vpop.f32.mrb[0].mxu0  ;;  %v296_v20 = vpop.f32.mrb[0].mxu1 }
 0x140   :  { %v480_v21 = vpop.f32.mrb[1].mxu0  ;;  %v321_v22 = vmul.f32 %v183_v19, %v183_v19  ;;  %v500_v23 = vpop.f32.mrb[1].mxu1  ;;  %v334_v25 = vmul.f32 %v296_v20, %v296_v20 }
 0x141   :  { %v186_v24 = vpop.f32.mrb[2].mxu0  ;;  %v806_v26 = vpop.f32.mrb[2].mxu1 }
 0x142   :  { %323 = vadd.xlane.f32.xlu0 %v321_v22  ;;  %v481_v27 = vpop.f32.mrb[3].mxu0  ;;  %336 = vadd.xlane.f32.xlu1 %v334_v25  ;;  %v501_v28 = vpop.f32.mrb[3].mxu1  ;;  %v322_v29 = vmul.f32 %v186_v24, %v186_v24  ;;  %v335_v30 = vmul.f32 %v806_v26, %v806_v26 }
 0x146   :  { %325 = vadd.xlane.f32.xlu0 %v322_v29  ;;  %338 = vadd.xlane.f32.xlu1 %v335_v30 }
 0x1cf   :  { %v324_v34 = vpop.xlane.xlu0 %323  ;;  %v337_v35 = vpop.xlane.xlu1 %336 }
 0x1d0   :  { %v327_v36 = vadd.f32 %v324_v34, %v319_v32  ;;  %v340_v37 = vadd.f32 %v337_v35, %v332_v33 }
 0x1d2   :  { %330 = vst.msk [vmem:[#allocation2] sm:$0xff] %vm314_vm1, %v327_v36  ;;  %342 = vst.msk [vmem:[#allocation3] sm:$0xff] %vm314_vm1, %v340_v37 }
 0x1d3   :  { %v326_v40 = vpop.xlane.xlu0 %325  ;;  %v339_v41 = vpop.xlane.xlu1 %338 }
 0x1d4   :  { %v328_v42 = vadd.f32 %v326_v40, %v320_v38  ;;  %v341_v43 = vadd.f32 %v339_v41, %v333_v39 }
 0x1d6   :  { %331 = vst.msk [vmem:[#allocation2 + $0x8] sm:$0xff] %vm314_vm1, %v328_v42  ;;  %343 = vst.msk [vmem:[#allocation3 + $0x8] sm:$0xff] %vm314_vm1, %v341_v43 }
 0x1d9   :  { %v347_v44 = vld [vmem:[#allocation2] sm:$0xff]  ;;  %v353_v45 = vld [vmem:[#allocation3] sm:$0xff] }
 0x1da   :  { %v349_v46 = vmax.f32 %v347_v44, 1e-24  ;;  %v355_v47 = vmax.f32 %v353_v45, 1e-24 }
 0x1dc   :  { %535 = vrsqrt.f32 %v349_v46 }
 0x1dd   :  { %537 = vrsqrt.f32 %v355_v47  ;;  %v348_v48 = vld [vmem:[#allocation2 + $0x8] sm:$0xff]  ;;  %v354_v50 = vld [vmem:[#allocation3 + $0x8] sm:$0xff] }
 0x1de   :  { %v350_v49 = vmax.f32 %v348_v48, 1e-24  ;;  %v356_v51 = vmax.f32 %v354_v50, 1e-24 }
 0x1e0   :  { %539 = vrsqrt.f32 %v350_v49 }
 0x1e1   :  { %541 = vrsqrt.f32 %v356_v51 }
 0x1e6   :  { %v536_v52 = vpop.eup %535 }
 0x1e7   :  { %v538_v53 = vpop.eup %537  ;;  %363 = vperm.xlu0 %515, %v536_v52  }
 0x1e8   :  { %379 = vperm.xlu1 %516, %v538_v53  }
 0x1ea   :  { %v540_v54 = vpop.eup %539 }
 0x1eb   :  { %v542_v55 = vpop.eup %541 }
 0x1ec   :  { %368 = vperm.xlu1 %516, %v540_v54  }
 0x1f0   :  { %384 = vperm.xlu1 %516, %v542_v55  }
 0x266   :  { %v364_v56 = vpop.permute.xlu0 %363 }
 0x267   :  { %v380_v57 = vpop.permute.xlu1 %379  ;;  %v371_v58 = vmul.f32 %v364_v56, %v183_v19 }
 0x268   :  { %v387_v59 = vmul.f32 %v380_v57, %v296_v20 }
 0x269   :  { %373 = vst [vmem:[#allocation12] sm:$0xff] %v371_v58 }
 0x26a   :  { %389 = vst [vmem:[#allocation13] sm:$0xff] %v387_v59 }
 0x26b   :  { %v369_v60 = vpop.permute.xlu1 %368 }
 0x26c   :  { %v372_v61 = vmul.f32 %v369_v60, %v186_v24 }
 0x26e   :  { %374 = vst [vmem:[#allocation12 + $0x8] sm:$0xff] %v372_v61 }
 0x26f   :  { %v385_v62 = vpop.permute.xlu1 %384 }
 0x270   :  { %642 = shalt.err (!%p639_p8)
}
 0x271   :  { %s643_s20 = scalar_lea.hbm %s843_s4, 256 }
 0x272   :  { %p644_p9 = scmp.ne.s32.totalorder %s843_s4, %s643_s20  ;;  %p647_p10 = scmp.lt.u32.totalorder %s643_s20, %s843_s4 }
 0x274   :  { %p649_p11 = pnand %p647_p10, %p644_p9 }
 0x276   :  { %652 = shalt.err (!%p649_p11)
}
 0x277   :  { %s696_s26 = smov 128   ;;  %s697_s27 = smov 8   ;;  %v388_v63 = vmul.f32 %v385_v62, %v806_v26 }
 0x278   :  { %402 = dma.vmem_to_hbm [thread:$0]  %s397_s30, 256, %s843_s4, [#allocation6], %s696_s26, %s696_s26, %s697_s27  }
 0x279   :  { %390 = vst [vmem:[#allocation13 + $0x8] sm:$0xff] %v388_v63  ;;  %s653_s0 = scalar_lea.vmem %s409_s1, 256  ;;  %p658_p13 = scmp.lt.s32.totalorder %s409_s1, %s409_s1 }
 0x27a   :  { %p654_p12 = scmp.ne.s32.totalorder %s409_s1, %s653_s0  ;;  %p659_p0 = scmp.lt.s32.totalorder %s653_s0, %s653_s0 }
 0x27c   :  { %p660_p1 = por %p659_p0, %p658_p13 }
 0x27e   :  { %p661_p2 = pnand %p660_p1, %p654_p12 }
 0x280   :  { %664 = shalt.err (!%p661_p2)
}
 0x281   :  { %s665_s8 = scalar_lea.hbm %s844_s5, 256 }
 0x282   :  { %p666_p3 = scmp.ne.s32.totalorder %s844_s5, %s665_s8  ;;  %p669_p4 = scmp.lt.u32.totalorder %s665_s8, %s844_s5 }
 0x284   :  { %p671_p5 = pnand %p669_p4, %p666_p3 }
 0x286   :  { %674 = shalt.err (!%p671_p5)
}
 0x287   :  { %414 = dma.vmem_to_hbm [thread:$0]  %s409_s1, 256, %s844_s5, [#allocation14], %s696_s26, %s696_s26, %s697_s27  }
 0x288   :  { %681 = dma.done.wait [#allocation6], 256  }
 0x289   :  { %682 = vsyncadd [#allocation6], 4294967040 }
 0x28a   :  { %683 = dma.done.wait [#allocation14], 256  }
 0x28b   :  { %684 = vsyncadd [#allocation14], 4294967040 }
 0x28c   :  { %421 = vsyncpa [#allocation5], 1 }
 0x28d   :  { %422 = vsyncpa [#allocation8], 1 }
 0x28e   :  { %423 = vsyncpa [#allocation11], 1 }
 0x28f   :  { %424 = vsyncpa [#allocation6], 1 }
 0x290   :  { %425 = vsyncpa [#allocation14], 1 }

</bundles_post_ra>
